<compile_context>
chip_gen: v6e
topology: v6e:2x2x1
jax: 0.10.0
libtpu: 0.0.40
codegen_flags: <defaults>
</compile_context>

<pallas_src>
import functools

import numpy as np
import jax
import jax.numpy as jnp
from jax.experimental import pallas as pl
from jax.experimental.pallas import tpu as pltpu


# Conservative scoped-VMEM budget that is safe on every generation (v7x has
# only 64 MiB physical per TensorCore).
# TODO(synk): per-generation tuning — raise to ~96-112 MiB and sweep larger
# tiles on v5e/v6e, keep <=48 MiB and smaller smooth tiles on v7x.
_VMEM_LIMIT = 48 * 1024 * 1024


def _cparams(n_grid_dims):
    return pltpu.CompilerParams(
        dimension_semantics=("parallel",) * n_grid_dims,
        vmem_limit_bytes=_VMEM_LIMIT)


def _pick_tile(total, target, multiple=8):
    """Largest tile <= target that divides `total` and is a multiple of
    `multiple` (else the full extent).

    TODO(synk): masked tail tiles for non-divisible extents (real FPN sizes).
    """
    if total <= target:
        return total
    for d in range(min(target, total), 0, -1):
        if total % d == 0 and d % multiple == 0:
            return d
    return total


def _bilinear_matrix(out_size, in_size, align_corners=True):
    """1-D bilinear interpolation matrix (out_size, in_size).

    align_corners=True matches the legacy F.upsample(mode='bilinear')
    semantics used by this (old) Cascade R-CNN code base.  The same matrix is
    used by both the Pallas path and the plain-JAX reference.
    """
    o = np.arange(out_size, dtype=np.float64)
    if align_corners:
        if out_size > 1:
            src = o * (in_size - 1) / (out_size - 1)
        else:
            src = np.zeros_like(o)
    else:
        src = np.clip((o + 0.5) * in_size / out_size - 0.5, 0.0, None)
    i0 = np.clip(np.floor(src).astype(np.int64), 0, in_size - 1)
    i1 = np.minimum(i0 + 1, in_size - 1)
    frac = np.clip(src - i0, 0.0, 1.0)
    U = np.zeros((out_size, in_size), dtype=np.float32)
    U[np.arange(out_size), i0] += (1.0 - frac).astype(np.float32)
    U[np.arange(out_size), i1] += frac.astype(np.float32)
    return U


# ----------------------------------------------------------------------------
# Kernel 1: fused p6 / p5 / p4 chain  (three 1x1 convs + skip adds, one pass)
# ----------------------------------------------------------------------------
def _top_kernel(c6_ref, c5_ref, c4_ref,
                wt_ref, bt_ref, w1_ref, b1_ref, w2_ref, b2_ref,
                p6_ref, p5_ref, p4_ref, *, cdt):
    # Inputs arrive in their original dtype; cast in-kernel (no extra HBM pass).
    t6 = jnp.dot(c6_ref[0].astype(cdt), wt_ref[...],
                 preferred_element_type=jnp.float32) + bt_ref[...]
    t5 = t6 + jnp.dot(c5_ref[0].astype(cdt), w1_ref[...],
                      preferred_element_type=jnp.float32) + b1_ref[...]
    t4 = t5 + jnp.dot(c4_ref[0].astype(cdt), w2_ref[...],
                      preferred_element_type=jnp.float32) + b2_ref[...]
    p6_ref[0] = t6.astype(p6_ref.dtype)
    p5_ref[0] = t5.astype(p5_ref.dtype)
    p4_ref[0] = t4.astype(p4_ref.dtype)


def fpn_top_chain(c4, c5, c6, w_top, b_top, w_lat1, b_lat1, w_lat2, b_lat2,
                  compute_dtype, out_dtype, rows_per_tile=512):
    N, H, W, _ = c4.shape
    # Literal _FPN forward adds latlayer1(c5)+p6 / latlayer2(c4)+p5 unresized.
    assert c5.shape[:3] == (N, H, W) and c6.shape[:3] == (N, H, W)
    S = H * W
    TS = _pick_tile(S, rows_per_tile)
    CF = w_top.shape[1]
    cdt = compute_dtype

    # Reshape is a free HBM view; the compute-dtype cast happens inside the
    # kernel so no standalone convert pass over the inputs is materialized.
    c6f = c6.reshape(N, S, c6.shape[-1])
    c5f = c5.reshape(N, S, c5.shape[-1])
    c4f = c4.reshape(N, S, c4.shape[-1])

    args = (c6f, c5f, c4f,
            w_top.astype(cdt), b_top.reshape(1, CF).astype(jnp.float32),
            w_lat1.astype(cdt), b_lat1.reshape(1, CF).astype(jnp.float32),
            w_lat2.astype(cdt), b_lat2.reshape(1, CF).astype(jnp.float32))

    def row_spec(ch):
        return pl.BlockSpec((1, TS, ch), lambda n, t: (n, t, 0))

    def full_spec(arr):
        zeros = (0,) * arr.ndim
        return pl.BlockSpec(tuple(arr.shape), lambda n, t: zeros)

    in_specs = [row_spec(c6.shape[-1]), row_spec(c5.shape[-1]),
                row_spec(c4.shape[-1])] + [full_spec(a) for a in args[3:]]
    out_spec = pl.BlockSpec((1, TS, CF), lambda n, t: (n, t, 0))
    out_shape = jax.ShapeDtypeStruct((N, S, CF), out_dtype)

    p6, p5, p4 = pl.pallas_call(
        functools.partial(_top_kernel, cdt=cdt),
        grid=(N, S // TS),
        in_specs=in_specs,
        out_specs=(out_spec, out_spec, out_spec),
        out_shape=(out_shape, out_shape, out_shape),
        compiler_params=_cparams(2),
    )(*args)
    return (p6.reshape(N, H, W, CF),
            p5.reshape(N, H, W, CF),
            p4.reshape(N, H, W, CF))


# ----------------------------------------------------------------------------
# Kernel 2: separable bilinear upsample, H pass  (a = Uh @ p_high)
# ----------------------------------------------------------------------------
def _hup_kernel(uh_ref, x_ref, o_ref, *, cdt):
    o_ref[0] = jnp.dot(uh_ref[...], x_ref[0].astype(cdt),
                       preferred_element_type=jnp.float32).astype(o_ref.dtype)


def h_upsample(p_high, h_out, uh, compute_dtype,
               rows_per_tile=128, cols_per_tile=4096):
    """H-direction bilinear resize of p_high (N, Hh, Wh, C) to h_out rows.

    The input is blocked along BOTH the output-row dim and the flattened
    lane (Wh*C) dim so blocks stay small / lane-dense and the grid has enough
    parallel steps for both TensorCores on v7x.
    TODO(synk): fuse this H pass into the smooth kernel (banded p_high
    BlockSpec) to drop the intermediate `a` tensor from HBM entirely.
    """
    N, Hh, Wh, CF = p_high.shape
    cdt = compute_dtype
    TH = _pick_tile(h_out, rows_per_tile)
    K = Wh * CF
    TC = _pick_tile(K, cols_per_tile, multiple=128)
    x2 = p_high.reshape(N, Hh, K)          # free HBM view; cast done in-kernel
    uh = jnp.asarray(uh, cdt)
    out = pl.pallas_call(
        functools.partial(_hup_kernel, cdt=cdt),
        grid=(N, h_out // TH, K // TC),
        in_specs=[pl.BlockSpec((TH, Hh), lambda n, t, c: (t, 0)),
                  pl.BlockSpec((1, Hh, TC), lambda n, t, c: (n, 0, c))],
        out_specs=pl.BlockSpec((1, TH, TC), lambda n, t, c: (n, t, c)),
        out_shape=jax.ShapeDtypeStruct((N, h_out, K), cdt),
        compiler_params=_cparams(3),
    )(uh, x2)
    return out.reshape(N, h_out, Wh, CF)


# ----------------------------------------------------------------------------
# Kernel 3: fused  W-upsample pass + lateral 1x1 conv + add + 3x3 smooth conv
# ----------------------------------------------------------------------------
def _smooth_kernel(uw_ref, ab_ref, at_ref, abot_ref,
                   cb_ref, ct_ref, cbot_ref,
                   wl_ref, bl_ref, ws_ref, bs_ref,
                   o_ref, pre_ref, *, tile_rows, width, cdt):
    R, W = tile_rows, width
    RW = (R + 2) * W
    t = pl.program_id(1)
    nt = pl.num_programs(1)

    uw = uw_ref[...]                       # (W, Wh)   compute dtype
    wlat = wl_ref[...]                     # (Cl, CF)  compute dtype
    blat = bl_ref[...]                     # (1, CF)   f32

    # --- lateral 1x1 conv over the whole tile body: ONE batched matmul ---
    cb = cb_ref[0].reshape(R * W, cb_ref.shape[-1]).astype(cdt)
    lat_body = jnp.dot(cb, wlat, preferred_element_type=jnp.float32) + blat

    # --- W pass of the separable bilinear upsample, one output row at a time.
    #     (Per-row matmuls avoid an in-kernel lane<->sublane relayout of the
    #     upsample result; the heavy lateral matmul above is already batched.)
    for i in range(R):
        ups = jnp.dot(uw, ab_ref[0, i].astype(cdt),
                      preferred_element_type=jnp.float32)          # (W, CF)
        pre_ref[(i + 1) * W:(i + 2) * W, :] = (
            ups + lat_body[i * W:(i + 1) * W]).astype(pre_ref.dtype)

    # --- halo rows: recomputed from the clamped neighbour rows, zeroed at the
    #     global top/bottom boundary (== the 3x3 conv's zero padding). ---
    def halo_row(a_row, c_row, keep):
        ups = jnp.dot(uw, a_row.astype(cdt), preferred_element_type=jnp.float32)
        lat = jnp.dot(c_row.astype(cdt), wlat,
                      preferred_element_type=jnp.float32) + blat
        return ((ups + lat) * keep.astype(jnp.float32)).astype(pre_ref.dtype)

    pre_ref[0:W, :] = halo_row(at_ref[0, 0], ct_ref[0, 0], t > 0)
    pre_ref[(R + 1) * W:(R + 2) * W, :] = halo_row(
        abot_ref[0, 0], cbot_ref[0, 0], t < nt - 1)

    # --- 3x3 smooth conv on the flattened ((R+2)*W, CF) band.
    #     The three W-shifted taps are built ONCE from a single load of the
    #     pre buffer (hoisted out of the dh loop) using non-negative XLU
    #     rolls.  NOTE: the left/right edge-column masks are what cancel the
    #     cross-row wraparound of the roll on the flattened buffer — do not
    #     change the flattening or the roll axis without updating them. ---
    p0 = pre_ref[...]                                          # single load
    col = jax.lax.broadcasted_iota(jnp.int32, (RW, 1), 0) % W
    zero = jnp.zeros_like(p0)
    pm = jnp.where(col == 0, zero, pltpu.roll(p0, 1, axis=0))          # j-1
    pp = jnp.where(col == W - 1, zero, pltpu.roll(p0, RW - 1, axis=0))  # j+1
    taps = (pm, p0, pp)

    # Single accumulation expression (no scratch read-modify-write).
    acc = None
    for dh in range(3):
        for dw in range(3):
            contrib = jnp.dot(taps[dw][dh * W:(dh + R) * W, :],
                              ws_ref[dh * 3 + dw],
                              preferred_element_type=jnp.float32)
            acc = contrib if acc is None else acc + contrib
    out = acc + bs_ref[...]
    o_ref[0] = out.reshape(R, W, out.shape[-1]).astype(o_ref.dtype)


def smooth_level(a, c_low, uw, w_lat, b_lat, w_sm, b_sm,
                 compute_dtype, out_dtype, rows_per_tile=16):
    """p = smooth3x3( W_upsample(a) + lateral1x1(c_low) ), tiled over rows."""
    N, Hl, Wh, CF = a.shape
    Nc, Hc, Wl, Cl = c_low.shape
    assert (Nc, Hc) == (N, Hl)
    assert Wl % 8 == 0, "smooth kernel assumes the output width is a multiple of 8"
    cdt = compute_dtype
    TH = _pick_tile(Hl, rows_per_tile)
    nt = Hl // TH

    uw = jnp.asarray(uw, cdt)
    w_lat = w_lat.astype(cdt)
    b_lat = b_lat.reshape(1, CF).astype(jnp.float32)
    w_sm9 = w_sm.reshape(9, CF, CF).astype(cdt)
    b_sm = b_sm.reshape(1, CF).astype(jnp.float32)

    def body_spec(width, ch):
        return pl.BlockSpec((1, TH, width, ch), lambda n, t: (n, t, 0, 0))

    def top_spec(width, ch):
        return pl.BlockSpec((1, 1, width, ch),
                            lambda n, t: (n, jnp.maximum(t * TH - 1, 0), 0, 0))

    def bot_spec(width, ch):
        return pl.BlockSpec((1, 1, width, ch),
                            lambda n, t: (n, jnp.minimum((t + 1) * TH, Hl - 1),
                                          0, 0))

    def full_spec(arr):
        zeros = (0,) * arr.ndim
        return pl.BlockSpec(tuple(arr.shape), lambda n, t: zeros)

    kernel = functools.partial(_smooth_kernel, tile_rows=TH, width=Wl, cdt=cdt)
    out = pl.pallas_call(
        kernel,
        grid=(N, nt),
        in_specs=[full_spec(uw),
                  body_spec(Wh, CF), top_spec(Wh, CF), bot_spec(Wh, CF),
                  body_spec(Wl, Cl), top_spec(Wl, Cl), bot_spec(Wl, Cl),
                  full_spec(w_lat), full_spec(b_lat),
                  full_spec(w_sm9), full_spec(b_sm)],
        out_specs=pl.BlockSpec((1, TH, Wl, CF), lambda n, t: (n, t, 0, 0)),
        out_shape=jax.ShapeDtypeStruct((N, Hl, Wl, CF), out_dtype),
        # Pre-smooth band kept in the compute dtype (bf16 by default) to halve
        # VMEM traffic; the old f32 accumulator scratch was removed.
        scratch_shapes=[pltpu.VMEM(((TH + 2) * Wl, CF), cdt)],
        compiler_params=_cparams(2),
    )(uw, a, a, a, c_low, c_low, c_low, w_lat, b_lat, w_sm9, b_sm)
    return out


# ----------------------------------------------------------------------------
# The _FPN.forward top-down fusion (p6..p2)
# ----------------------------------------------------------------------------
def fpn_topdown(c2, c3, c4, c5, c6, params, *, compute_dtype=jnp.bfloat16,
                out_dtype=jnp.float32, align_corners=True,
                top_rows=512, hup_rows=128, hup_cols=4096, smooth_rows=16):
    cdt = compute_dtype
    p6, p5, p4 = fpn_top_chain(
        c4, c5, c6,
        params["w_top"], params["b_top"],
        params["w_lat1"], params["b_lat1"],
        params["w_lat2"], params["b_lat2"],
        cdt, out_dtype, rows_per_tile=top_rows)

    # p3 = smooth1(upsample_add(p4, latlayer3(c3)))
    H3, W3 = c3.shape[1], c3.shape[2]
    a3 = h_upsample(p4, H3, _bilinear_matrix(H3, p4.shape[1], align_corners),
                    cdt, rows_per_tile=hup_rows, cols_per_tile=hup_cols)
    p3 = smooth_level(a3, c3, _bilinear_matrix(W3, p4.shape[2], align_corners),
                      params["w_lat3"], params["b_lat3"],
                      params["w_sm1"], params["b_sm1"],
                      cdt, out_dtype, rows_per_tile=smooth_rows)

    # p2 = smooth2(upsample_add(p3, latlayer4(c2)))
    H2, W2 = c2.shape[1], c2.shape[2]
    a2 = h_upsample(p3, H2, _bilinear_matrix(H2, p3.shape[1], align_corners),
                    cdt, rows_per_tile=hup_rows, cols_per_tile=hup_cols)
    p2 = smooth_level(a2, c2, _bilinear_matrix(W2, p3.shape[2], align_corners),
                      params["w_lat4"], params["b_lat4"],
                      params["w_sm2"], params["b_sm2"],
                      cdt, out_dtype, rows_per_tile=smooth_rows)
    return p2, p3, p4, p5, p6


# ----------------------------------------------------------------------------
# Plain-JAX reference (sanity check of the Pallas kernels)
# ----------------------------------------------------------------------------
def _ref_topdown(c2, c3, c4, c5, c6, params, align_corners=True):
    def pw(x, w, b):
        return jnp.einsum("nhwc,cd->nhwd", x, w) + b

    def ups(x, Ho, Wo):
        Uh = jnp.asarray(_bilinear_matrix(Ho, x.shape[1], align_corners))
        Uw = jnp.asarray(_bilinear_matrix(Wo, x.shape[2], align_corners))
        t = jnp.einsum("oh,nhwc->nowc", Uh, x)
        return jnp.einsum("pw,nowc->nopc", Uw, t)

    def c3x3(x, w, b):
        return jax.lax.conv_general_dilated(
            x, w, (1, 1), "SAME",
            dimension_numbers=("NHWC", "HWIO", "NHWC")) + b

    p6 = pw(c6, params["w_top"], params["b_top"])
    p5 = pw(c5, params["w_lat1"], params["b_lat1"]) + p6
    p4 = pw(c4, params["w_lat2"], params["b_lat2"]) + p5
    p3 = ups(p4, c3.shape[1], c3.shape[2]) + pw(c3, params["w_lat3"], params["b_lat3"])
    p3 = c3x3(p3, params["w_sm1"], params["b_sm1"])
    p2 = ups(p3, c2.shape[1], c2.shape[2]) + pw(c2, params["w_lat4"], params["b_lat4"])
    p2 = c3x3(p2, params["w_sm2"], params["b_sm2"])
    return p2, p3, p4, p5, p6


def _check(got, want, tol):
    """Scale-aware comparison (atol relative to the output magnitude)."""
    got = np.asarray(jnp.asarray(got, jnp.float32))
    want = np.asarray(jnp.asarray(want, jnp.float32))
    scale = float(np.max(np.abs(want))) + 1e-6
    np.testing.assert_allclose(got, want, rtol=tol, atol=tol * scale)


# ----------------------------------------------------------------------------
# Main
# ----------------------------------------------------------------------------
if __name__ == "__main__":
    key = jax.random.PRNGKey(0)

    # Small synthetic backbone outputs.  c4/c5/c6 share spatial size (the
    # literal forward adds latlayer1(c5)+p6 and latlayer2(c4)+p5 unresized).
    N, CF = 2, 128
    C2, C3, C4, C5, C6 = 32, 64, 128, 128, 128
    H4 = W4 = 4
    H3 = W3 = 8
    H2 = W2 = 16

    ks = jax.random.split(key, 24)
    c2 = jax.random.normal(ks[0], (N, H2, W2, C2), jnp.float32)
    c3 = jax.random.normal(ks[1], (N, H3, W3, C3), jnp.float32)
    c4 = jax.random.normal(ks[2], (N, H4, W4, C4), jnp.float32)
    c5 = jax.random.normal(ks[3], (N, H4, W4, C5), jnp.float32)
    c6 = jax.random.normal(ks[4], (N, H4, W4, C6), jnp.float32)

    # Weights ~ normal(0, 0.01) as in _init_weights.  The real init zeroes the
    # biases; small random biases are used here so the bias path is tested.
    std = 0.01
    params = {
        "w_top":  std * jax.random.normal(ks[5], (C6, CF), jnp.float32),
        "b_top":  std * jax.random.normal(ks[12], (CF,), jnp.float32),
        "w_lat1": std * jax.random.normal(ks[6], (C5, CF), jnp.float32),
        "b_lat1": std * jax.random.normal(ks[13], (CF,), jnp.float32),
        "w_lat2": std * jax.random.normal(ks[7], (C4, CF), jnp.float32),
        "b_lat2": std * jax.random.normal(ks[14], (CF,), jnp.float32),
        "w_lat3": std * jax.random.normal(ks[8], (C3, CF), jnp.float32),
        "b_lat3": std * jax.random.normal(ks[15], (CF,), jnp.float32),
        "w_lat4": std * jax.random.normal(ks[9], (C2, CF), jnp.float32),
        "b_lat4": std * jax.random.normal(ks[16], (CF,), jnp.float32),
        "w_sm1":  std * jax.random.normal(ks[10], (3, 3, CF, CF), jnp.float32),
        "b_sm1":  std * jax.random.normal(ks[17], (CF,), jnp.float32),
        "w_sm2":  std * jax.random.normal(ks[11], (3, 3, CF, CF), jnp.float32),
        "b_sm2":  std * jax.random.normal(ks[18], (CF,), jnp.float32),
    }

    refs = _ref_topdown(c2, c3, c4, c5, c6, params)

    # Small tiles so the test exercises the multi-tile grid + halo code paths.
    tiles = dict(top_rows=8, hup_rows=8, hup_cols=256, smooth_rows=8)

    # f32 compute path (tighter, scale-aware check).
    outs32 = fpn_topdown(c2, c3, c4, c5, c6, params,
                         compute_dtype=jnp.float32, **tiles)
    outs32 = jax.block_until_ready(outs32)
    for got, want in zip(outs32, refs):
        _check(got, want, 1e-2)

    # bf16 compute path (the performance configuration).
    outs16 = fpn_topdown(c2, c3, c4, c5, c6, params,
                         compute_dtype=jnp.bfloat16, **tiles)
    outs16 = jax.block_until_ready(outs16)
    for got, want in zip(outs16, refs):
        _check(got, want, 3e-2)

    print("KERNEL_OK")
</pallas_src>

<mosaic_0001>
module attributes {stable_mosaic.version = 11 : i64} {
  func.func @_top_kernel(%arg0: i32, %arg1: i32, %arg2: memref<1x8x128xf32, #tpu.memory_space<vmem>>, %arg3: memref<1x8x128xf32, #tpu.memory_space<vmem>>, %arg4: memref<1x8x128xf32, #tpu.memory_space<vmem>>, %arg5: memref<128x128xf32, #tpu.memory_space<vmem>>, %arg6: memref<1x128xf32, #tpu.memory_space<vmem>>, %arg7: memref<128x128xf32, #tpu.memory_space<vmem>>, %arg8: memref<1x128xf32, #tpu.memory_space<vmem>>, %arg9: memref<128x128xf32, #tpu.memory_space<vmem>>, %arg10: memref<1x128xf32, #tpu.memory_space<vmem>>, %arg11: memref<1x8x128xf32, #tpu.memory_space<vmem>>, %arg12: memref<1x8x128xf32, #tpu.memory_space<vmem>>, %arg13: memref<1x8x128xf32, #tpu.memory_space<vmem>>) attributes {dimension_semantics = [#tpu.dimension_semantics<parallel>, #tpu.dimension_semantics<parallel>], iteration_bounds = array<i64: 2, 2>, scalar_prefetch = 0 : i64, scratch_operands = 0 : i64, tpu.core_type = #tpu.core_type<tc>, window_params = [{transform_indices = @transform_0, window_bounds = array<i64: 1, 8, 128>}, {transform_indices = @transform_1, window_bounds = array<i64: 1, 8, 128>}, {transform_indices = @transform_2, window_bounds = array<i64: 1, 8, 128>}, {pipeline_mode = #tpu.pipeline_mode<synchronous>, transform_indices = @transform_3, window_bounds = array<i64: 128, 128>}, {pipeline_mode = #tpu.pipeline_mode<synchronous>, transform_indices = @transform_4, window_bounds = array<i64: 1, 128>}, {pipeline_mode = #tpu.pipeline_mode<synchronous>, transform_indices = @transform_5, window_bounds = array<i64: 128, 128>}, {pipeline_mode = #tpu.pipeline_mode<synchronous>, transform_indices = @transform_6, window_bounds = array<i64: 1, 128>}, {pipeline_mode = #tpu.pipeline_mode<synchronous>, transform_indices = @transform_7, window_bounds = array<i64: 128, 128>}, {pipeline_mode = #tpu.pipeline_mode<synchronous>, transform_indices = @transform_8, window_bounds = array<i64: 1, 128>}, {transform_indices = @transform_9, window_bounds = array<i64: 1, 8, 128>}, {transform_indices = @transform_10, window_bounds = array<i64: 1, 8, 128>}, {transform_indices = @transform_11, window_bounds = array<i64: 1, 8, 128>}]} {
    %c0 = arith.constant 0 : index
    %c0_0 = arith.constant 0 : index
    %c0_1 = arith.constant 0 : index
    %0 = vector.load %arg2[%c0, %c0_0, %c0_1] : memref<1x8x128xf32, #tpu.memory_space<vmem>>, vector<1x8x128xf32>
    %1 = vector.shape_cast %0 : vector<1x8x128xf32> to vector<8x128xf32>
    %c0_2 = arith.constant 0 : index
    %c0_3 = arith.constant 0 : index
    %2 = vector.load %arg5[%c0_2, %c0_3] : memref<128x128xf32, #tpu.memory_space<vmem>>, vector<128x128xf32>
    %cst = arith.constant dense<0.000000e+00> : vector<8x128xf32>
    %3 = tpu.matmul %1, %2, %cst {dimension_numbers = #tpu.dot_dimension_numbers<[1], [0], [0], [1], [0, 0, 1, 1], [], []>} : vector<8x128xf32>, vector<128x128xf32>, vector<8x128xf32> -> vector<8x128xf32>
    %c0_4 = arith.constant 0 : index
    %c0_5 = arith.constant 0 : index
    %4 = vector.load %arg6[%c0_4, %c0_5] : memref<1x128xf32, #tpu.memory_space<vmem>>, vector<1x128xf32>
    %5 = vector.broadcast %4 : vector<1x128xf32> to vector<8x128xf32>
    %6 = arith.addf %3, %5 : vector<8x128xf32>
    %c0_6 = arith.constant 0 : index
    %c0_7 = arith.constant 0 : index
    %c0_8 = arith.constant 0 : index
    %7 = vector.load %arg3[%c0_6, %c0_7, %c0_8] : memref<1x8x128xf32, #tpu.memory_space<vmem>>, vector<1x8x128xf32>
    %8 = vector.shape_cast %7 : vector<1x8x128xf32> to vector<8x128xf32>
    %c0_9 = arith.constant 0 : index
    %c0_10 = arith.constant 0 : index
    %9 = vector.load %arg7[%c0_9, %c0_10] : memref<128x128xf32, #tpu.memory_space<vmem>>, vector<128x128xf32>
    %cst_11 = arith.constant dense<0.000000e+00> : vector<8x128xf32>
    %10 = tpu.matmul %8, %9, %cst_11 {dimension_numbers = #tpu.dot_dimension_numbers<[1], [0], [0], [1], [0, 0, 1, 1], [], []>} : vector<8x128xf32>, vector<128x128xf32>, vector<8x128xf32> -> vector<8x128xf32>
    %11 = arith.addf %6, %10 : vector<8x128xf32>
    %c0_12 = arith.constant 0 : index
    %c0_13 = arith.constant 0 : index
    %12 = vector.load %arg8[%c0_12, %c0_13] : memref<1x128xf32, #tpu.memory_space<vmem>>, vector<1x128xf32>
    %13 = vector.broadcast %12 : vector<1x128xf32> to vector<8x128xf32>
    %14 = arith.addf %11, %13 : vector<8x128xf32>
    %c0_14 = arith.constant 0 : index
    %c0_15 = arith.constant 0 : index
    %c0_16 = arith.constant 0 : index
    %15 = vector.load %arg4[%c0_14, %c0_15, %c0_16] : memref<1x8x128xf32, #tpu.memory_space<vmem>>, vector<1x8x128xf32>
    %16 = vector.shape_cast %15 : vector<1x8x128xf32> to vector<8x128xf32>
    %c0_17 = arith.constant 0 : index
    %c0_18 = arith.constant 0 : index
    %17 = vector.load %arg9[%c0_17, %c0_18] : memref<128x128xf32, #tpu.memory_space<vmem>>, vector<128x128xf32>
    %cst_19 = arith.constant dense<0.000000e+00> : vector<8x128xf32>
    %18 = tpu.matmul %16, %17, %cst_19 {dimension_numbers = #tpu.dot_dimension_numbers<[1], [0], [0], [1], [0, 0, 1, 1], [], []>} : vector<8x128xf32>, vector<128x128xf32>, vector<8x128xf32> -> vector<8x128xf32>
    %19 = arith.addf %14, %18 : vector<8x128xf32>
    %c0_20 = arith.constant 0 : index
    %c0_21 = arith.constant 0 : index
    %20 = vector.load %arg10[%c0_20, %c0_21] : memref<1x128xf32, #tpu.memory_space<vmem>>, vector<1x128xf32>
    %21 = vector.broadcast %20 : vector<1x128xf32> to vector<8x128xf32>
    %22 = arith.addf %19, %21 : vector<8x128xf32>
    %c0_22 = arith.constant 0 : index
    %c0_23 = arith.constant 0 : index
    %c0_24 = arith.constant 0 : index
    %23 = vector.load %arg11[%c0_22, %c0_23, %c0_24] : memref<1x8x128xf32, #tpu.memory_space<vmem>>, vector<1x8x128xf32>
    %24 = vector.shape_cast %23 : vector<1x8x128xf32> to vector<8x128xf32>
    %25 = vector.shape_cast %6 : vector<8x128xf32> to vector<1x8x128xf32>
    tpu.vector_store %arg11[%c0_22, %c0_23, %c0_24], %25 {strides = array<i32>} : memref<1x8x128xf32, #tpu.memory_space<vmem>>, vector<1x8x128xf32>,
    %c0_25 = arith.constant 0 : index
    %c0_26 = arith.constant 0 : index
    %c0_27 = arith.constant 0 : index
    %26 = vector.load %arg12[%c0_25, %c0_26, %c0_27] : memref<1x8x128xf32, #tpu.memory_space<vmem>>, vector<1x8x128xf32>
    %27 = vector.shape_cast %26 : vector<1x8x128xf32> to vector<8x128xf32>
    %28 = vector.shape_cast %14 : vector<8x128xf32> to vector<1x8x128xf32>
    tpu.vector_store %arg12[%c0_25, %c0_26, %c0_27], %28 {strides = array<i32>} : memref<1x8x128xf32, #tpu.memory_space<vmem>>, vector<1x8x128xf32>,
    %c0_28 = arith.constant 0 : index
    %c0_29 = arith.constant 0 : index
    %c0_30 = arith.constant 0 : index
    %29 = vector.load %arg13[%c0_28, %c0_29, %c0_30] : memref<1x8x128xf32, #tpu.memory_space<vmem>>, vector<1x8x128xf32>
    %30 = vector.shape_cast %29 : vector<1x8x128xf32> to vector<8x128xf32>
    %31 = vector.shape_cast %22 : vector<8x128xf32> to vector<1x8x128xf32>
    tpu.vector_store %arg13[%c0_28, %c0_29, %c0_30], %31 {strides = array<i32>} : memref<1x8x128xf32, #tpu.memory_space<vmem>>, vector<1x8x128xf32>,
    return
  }
  func.func @transform_0(%arg0: i32, %arg1: i32) -> (i32, i32, i32) {
    %c0_i32 = arith.constant 0 : i32
    %c0_i32_0 = arith.constant 0 : i32
    return %arg0, %arg1, %c0_i32 : i32, i32, i32
  }
  func.func @transform_1(%arg0: i32, %arg1: i32) -> (i32, i32, i32) {
    %c0_i32 = arith.constant 0 : i32
    %c0_i32_0 = arith.constant 0 : i32
    return %arg0, %arg1, %c0_i32 : i32, i32, i32
  }
  func.func @transform_2(%arg0: i32, %arg1: i32) -> (i32, i32, i32) {
    %c0_i32 = arith.constant 0 : i32
    %c0_i32_0 = arith.constant 0 : i32
    return %arg0, %arg1, %c0_i32 : i32, i32, i32
  }
  func.func @transform_3(%arg0: i32, %arg1: i32) -> (i32, i32) {
    %c0_i32 = arith.constant 0 : i32
    %c0_i32_0 = arith.constant 0 : i32
    %c0_i32_1 = arith.constant 0 : i32
    return %c0_i32, %c0_i32_0 : i32, i32
  }
  func.func @transform_4(%arg0: i32, %arg1: i32) -> (i32, i32) {
    %c0_i32 = arith.constant 0 : i32
    %c0_i32_0 = arith.constant 0 : i32
    %c0_i32_1 = arith.constant 0 : i32
    return %c0_i32, %c0_i32_0 : i32, i32
  }
  func.func @transform_5(%arg0: i32, %arg1: i32) -> (i32, i32) {
    %c0_i32 = arith.constant 0 : i32
    %c0_i32_0 = arith.constant 0 : i32
    %c0_i32_1 = arith.constant 0 : i32
    return %c0_i32, %c0_i32_0 : i32, i32
  }
  func.func @transform_6(%arg0: i32, %arg1: i32) -> (i32, i32) {
    %c0_i32 = arith.constant 0 : i32
    %c0_i32_0 = arith.constant 0 : i32
    %c0_i32_1 = arith.constant 0 : i32
    return %c0_i32, %c0_i32_0 : i32, i32
  }
  func.func @transform_7(%arg0: i32, %arg1: i32) -> (i32, i32) {
    %c0_i32 = arith.constant 0 : i32
    %c0_i32_0 = arith.constant 0 : i32
    %c0_i32_1 = arith.constant 0 : i32
    return %c0_i32, %c0_i32_0 : i32, i32
  }
  func.func @transform_8(%arg0: i32, %arg1: i32) -> (i32, i32) {
    %c0_i32 = arith.constant 0 : i32
    %c0_i32_0 = arith.constant 0 : i32
    %c0_i32_1 = arith.constant 0 : i32
    return %c0_i32, %c0_i32_0 : i32, i32
  }
  func.func @transform_9(%arg0: i32, %arg1: i32) -> (i32, i32, i32) {
    %c0_i32 = arith.constant 0 : i32
    %c0_i32_0 = arith.constant 0 : i32
    return %arg0, %arg1, %c0_i32 : i32, i32, i32
  }
  func.func @transform_10(%arg0: i32, %arg1: i32) -> (i32, i32, i32) {
    %c0_i32 = arith.constant 0 : i32
    %c0_i32_0 = arith.constant 0 : i32
    return %arg0, %arg1, %c0_i32 : i32, i32, i32
  }
  func.func @transform_11(%arg0: i32, %arg1: i32) -> (i32, i32, i32) {
    %c0_i32 = arith.constant 0 : i32
    %c0_i32_0 = arith.constant 0 : i32
    return %arg0, %arg1, %c0_i32 : i32, i32, i32
  }
}

</mosaic_0001>

<bundles_post_ra>
// kernel: tpu_custom_call.1
= control target key start
LH: loop header
LB: loop body
LE: loop exit
PB: predicated region body
PF: predicated region fallthrough
CT: control target
= control target key end

     0   :  { %s2263_s0 = inlined_call_operand.hbm [shape: f32[2,16,128], index: 0, kind: input, shape index: {}]   ;;  %s2264_s1 = inlined_call_operand.hbm [shape: f32[2,16,128], index: 1, kind: input, shape index: {}]   ;;  %s2265_s2 = inlined_call_operand.hbm [shape: f32[2,16,128], index: 2, kind: input, shape index: {}]   ;;  %s2266_s3 = inlined_call_operand.hbm [shape: f32[128,128], index: 3, kind: input, shape index: {}]   ;;  %s2267_s4 = inlined_call_operand.vmem [shape: f32[1,128], index: 4, kind: input, shape index: {}]   ;;  %s2268_s5 = inlined_call_operand.hbm [shape: f32[128,128], index: 5, kind: input, shape index: {}]   ;;  %s2269_s6 = inlined_call_operand.vmem [shape: f32[1,128], index: 6, kind: input, shape index: {}]   ;;  %s2270_s7 = inlined_call_operand.hbm [shape: f32[128,128], index: 7, kind: input, shape index: {}]   ;;  %s2271_s8 = inlined_call_operand.vmem [shape: f32[1,128], index: 8, kind: input, shape index: {}]   ;;  %s2272_s9 = inlined_call_operand.hbm [shape: f32[2,16,128], index: 9, kind: output, shape index: {0}]   ;;  %s2273_s10 = inlined_call_operand.hbm [shape: f32[2,16,128], index: 10, kind: output, shape index: {1}]   ;;  %s2274_s11 = inlined_call_operand.hbm [shape: f32[2,16,128], index: 11, kind: output, shape index: {2}]  }
   0x1   :  { %2298 = sst [smem:[#allocation30_spill]] %s2264_s1 }
   0x2   :  { %2299 = sst [smem:[#allocation31_spill]] %s2266_s3 }
   0x3   :  { %2300 = sst [smem:[#allocation32_spill]] %s2268_s5 }
   0x4   :  { %2301 = sst [smem:[#allocation33_spill]] %s2269_s6 }
   0x5   :  { %2302 = sst [smem:[#allocation34_spill]] %s2271_s8 }
   0x6   :  { %2303 = sst [smem:[#allocation35_spill]] %s2272_s9 }
   0x7   :  { %2304 = sst [smem:[#allocation36_spill]] %s2273_s10 }
   0x8   :  { %2305 = sst [smem:[#allocation37_spill]] %s2274_s11 }
   0x9   :  { %17 = vsyncpa [#allocation3], 0 }
   0xa   :  { %19 = vsyncpa [#allocation3 + $0x1], 0 }
   0xb   :  { %20 = vsyncpa [#allocation6], 0 }
   0xc   :  { %22 = vsyncpa [#allocation6 + $0x1], 0 }
   0xd   :  { %23 = vsyncpa [#allocation9], 0 }
   0xe   :  { %24 = vsyncpa [#allocation12], 0 }
   0xf   :  { %25 = vsyncpa [#allocation4], 0 }
  0x10   :  { %27 = vsyncpa [#allocation4 + $0x1], 0 }
  0x11   :  { %28 = vsyncpa [#allocation15], 0 }
  0x12   :  { %30 = vsyncpa [#allocation15 + $0x1], 0  ;;  %s1866_s17 = smov 0   ;;  %s1868_s18 = smov 0  }
  0x13   :  { %s1870_s19 = smov 0   ;;  %s1872_s20 = smov 0  }
  0x14   :  { %s1874_s21 = smov 0   ;;  %s1876_s22 = smov 0  }
  0x15   :  { %s1878_s23 = smov 0   ;;  %s1880_s24 = smov 0  }
  0x16 LB: > { %2306 = sst [smem:[#allocation23_spill]] %s1763_s17  ;;  %s1907_s25 = sadd.s32 4294967295, %s1791_s24   ;;  %s1791_s24 = sphi %s1880_s24, %s36_s24   ;;  %s1787_s23 = sphi %s1878_s23, %s2350_s23   ;;  %s1783_s22 = sphi %s1876_s22, %s2349_s22   ;;  %s1779_s21 = sphi %s1874_s21, %s2348_s21   ;;  %s1775_s20 = sphi %s1872_s20, %s2347_s20   ;;  %s1771_s19 = sphi %s1870_s19, %s2353_s19   ;;  %s1767_s18 = sphi %s1868_s18, %s2352_s18   ;;  %s1763_s17 = sphi %s1866_s17, %s2351_s17  }
  0x17   : > { %2307 = sst [smem:[#allocation24_spill]] %s1783_s22  ;;  %s2275_s26 = sadd.s32 4294967294, %s1791_s24  }
  0x18   : > { %2308 = sst [smem:[#allocation25_spill]] %s1787_s23  ;;  %p70_p0 = scmp.ne.s32.totalorder %s1767_s18, %s1763_s17 }
  0x19   : > { %p2292_p1 = scmp.eq.s32.totalorder %s1907_s25, 0  ;;  %p284_p3 = scmp.eq.s32.totalorder %s2275_s26, 3 }
  0x1a   : > { %p1138_p5 = scmp.ge.s32.totalorder %s1791_s24, 1  ;;  %p347_p7 = scmp.lt.s32.totalorder %s1791_s24, 5 }
  0x1b   : > { %p1918_p4 = por %p2292_p1, %p70_p0  ;;  %p1923_p6 = por %p284_p3, %p70_p0 }
  0x1c   : > { %p1928_p8 = pnand %p1138_p5, %p347_p7  ;;  %s1793_s30 = smov [#allocation8]  }
  0x1d   : > { %s2309_s27 = scalar_select %p1918_p4, 1, 0 }
  0x1e   : > { %s2310_s28 = scalar_select %p1923_p6, 1, 0 }
  0x1f   : > { %s2312_s29 = scalar_select %p1928_p8, 1, 0 }
  0x20   : > { %2311 = sst [smem:[#allocation26_spill]] %s2310_s28  ;;  %s359_s12 = sshll.u32 %s1793_s30, 4  ;;  %s360_s12 = int_to_ptr.vmem [resolvable:$true] %s359_s12 }
  0x21   : > { %p1356_p9 = pneg %p1928_p8  ;;  %s1476_s14 = scalar_lea.vmem %s360_s12, 2048 }
  0x22   : > { %p1477_p12 = scmp.ne.s32.totalorder %s360_s12, %s1476_s14  ;;  %p1484_p3 = scmp.lt.s32.totalorder %s360_s12, %s360_s12 }
  0x23   : > { %p1936_p10 = pnand %p1356_p9, %p2292_p1  ;;  %p1485_p5 = scmp.lt.s32.totalorder %s1476_s14, %s1476_s14 }
  0x25   : > { %p2293_p11 = pneg %p1936_p10  ;;  %p1486_p7 = por %p1485_p5, %p1484_p3 }
  0x27   : > { %p1479_p13 = pnand %p1477_p12, %p2293_p11 }
  0x29   : > { %p1480_p0 = pneg %p1479_p13 }
  0x2b   : > { %p1487_p2 = pnand %p1486_p7, %p1480_p0 }
  0x2d   : > { %1490 = shalt.err (!%p1487_p2)
}
  0x2e   : > { %s2279_s15 = smov 128   ;;  %s2281_s16 = smov 8  }
  0x2f   : > { %s2314_s3 = sld [smem:[#allocation31_spill]]  ;;  %s45_s26 = sadd.s32 1, %s1783_s22 }
  0x30   : > { %p46_p2 = scmp.ge.s32.totalorder %s45_s26, 2  ;;  %s48_s28 = sadd.s32 1, %s1787_s23 }
  0x31   : > { %s57_s17 = sadd.s32 1, %s1771_s19  ;;  %p64_p9 = scmp.ne.s32.totalorder %s1771_s19, %s1767_s18 }
  0x32   : > { %s2355_s26 = smov (%p46_p2, %s45_s26), 0  ;;  %s2357_s28 = smov (!%p46_p2, %s48_s28), %s1787_s23 }
  0x33   : > { %2315 = sst [smem:[#allocation27_spill]] %s2355_s26  ;;  %s53_s11 = ssub.s32 %s1783_s22, %s2355_s26 }
  0x34   : > { %p65_p12 = scmp.eq.s32.totalorder %s1791_s24, 0  ;;  %p50_p13 = scmp.ge.s32.totalorder %s2357_s28, 2 }
  0x35   : > { %1359 = dma.hbm_to_vmem [thread:$0]  (!%p1936_p10), %s2314_s3, 2048, %s360_s12, [#allocation9], %s2279_s15, %s2279_s15, %s2281_s16  }
  0x36   : > { %p2316_p0 = scmp.eq.s32.totalorder %s1907_s25, 3  ;;  %p66_p5 = por %p65_p12, %p64_p9 }
  0x37   : > { %p1389_p7 = scmp.lt.s32.totalorder %s1791_s24, 4  ;;  %s2359_s28 = smov (%p50_p13, %s2357_s28), 0 }
  0x38   : > { %p1966_p3 = por %p2316_p0, %p64_p9  ;;  %2319 = sst [smem:[#allocation29_spill]] %s2359_s28 }
  0x39   : > { %s2288_s30 = sand.u32 1, %s1771_s19   ;;  %s1144_s14 = sshll.u32 %s1787_s23, 1 }
  0x3a   : > { %s2317_s12 = scalar_select %p1966_p3, 1, 0 }
  0x3b   : > { %s52_s15 = ssub.s32 %s1787_s23, %s2359_s28  ;;  %s1979_s16 = sshll.u32 %s2288_s30, 3 }
  0x3c   : > { %2318 = sst [smem:[#allocation28_spill]] %s2317_s12  ;;  %s54_s3 = sor.u32 %s53_s11, %s52_s15 }
  0x3d   : > { %s417_s26 = sadd.s32 %s1783_s22, %s1144_s14  ;;  %p55_p2 = scmp.eq.s32.totalorder %s54_s3, 0 }
  0x3e   : > { %s1982_s8 = sshll.u32 %s417_s26, 7  ;;  %p1984_p0 = pnand %p1389_p7, %p66_p5 }
  0x3f   : > { %s428_s6 = sand.u32 1, %s1791_s24   ;;  %s2321_s1 = sld [smem:[#allocation30_spill]] }
  0x40   : > { %s1990_s9 = scalar_select %p55_p2, %s1771_s19, %s57_s17  }
  0x41   : > { %s432_s12 = scalar_lea.vmem [#allocation5], %s1979_s16  ;;  %s1796_s3 = smov [#allocation10]  }
  0x42   : > { %s441_s11 = sshll.u32 %s432_s12, 4  ;;  %s375_s26 = sshll.u32 %s1796_s3, 4  ;;  %s442_s11 = int_to_ptr.vmem [resolvable:$true] %s441_s11  ;;  %s376_s26 = int_to_ptr.vmem [resolvable:$true] %s375_s26 }
  0x43   : > { %s1997_s15 = scalar_lea.sflag [#allocation6], %s428_s6  ;;  %p2294_p9 = pneg %p1984_p0 }
  0x44   : > { %s1504_s14 = scalar_lea.vmem %s442_s11, 128  ;;  %s1797_s17 = smov [#allocation5]  }
  0x45   : > { %s439_s30 = scalar_lea.hbm %s2321_s1, %s1982_s8  ;;  %p1505_p12 = scmp.ne.s32.totalorder %s442_s11, %s1504_s14 }
  0x46   : > { %s1509_s22 = sshll.u32 %s1797_s17, 4  ;;  %s1510_s22 = int_to_ptr.vmem [resolvable:$false] %s1509_s22 }
  0x47   : > { %p1507_p13 = pnand %p1505_p12, %p2294_p9  ;;  %s1511_s23 = scalar_lea.vmem %s1510_s22, 256 }
  0x48   : > { %p1512_p7 = scmp.lt.s32.totalorder %s442_s11, %s1510_s22  ;;  %p1513_p2 = scmp.lt.s32.totalorder %s1511_s23, %s1504_s14 }
  0x49   : > { %p1508_p5 = pneg %p1507_p13 }
  0x4a   : > { %p1514_p1 = por %p1513_p2, %p1512_p7 }
  0x4c   : > { %p1515_p11 = pnand %p1514_p1, %p1508_p5 }
  0x4e   : > { %1518 = shalt.err (!%p1515_p11)
}
  0x4f   : > { %1372 = dma.hbm_to_vmem [thread:$0]  (!%p1984_p0), %s439_s30, 128, %s442_s11, %s1997_s15  }
  0x50   : > { %s1530_s6 = scalar_lea.vmem %s376_s26, 2048  ;;  %p2322_p12 = pneg %p1936_p10 }
  0x51   : > { %p1531_p6 = scmp.ne.s32.totalorder %s376_s26, %s1530_s6  ;;  %p1538_p3 = scmp.lt.s32.totalorder %s376_s26, %s376_s26 }
  0x52   : > { %p1539_p4 = scmp.lt.s32.totalorder %s1530_s6, %s1530_s6 }
  0x53   : > { %p1533_p13 = pnand %p1531_p6, %p2322_p12 }
  0x54   : > { %p1540_p8 = por %p1539_p4, %p1538_p3 }
  0x55   : > { %p1534_p9 = pneg %p1533_p13 }
  0x57   : > { %p1541_p2 = pnand %p1540_p8, %p1534_p9 }
  0x59   : > { %1544 = shalt.err (!%p1541_p2)
}
  0x5a   : > { %s2323_s22 = smov 8   ;;  %s2324_s28 = smov 128  }
  0x5b   : > { %s2325_s5 = sld [smem:[#allocation32_spill]]  ;;  %s1798_s30 = smov [#allocation11]  }
  0x5c   : > { %s391_s11 = sshll.u32 %s1798_s30, 4  ;;  %p2326_p6 = pmov %p2322_p12  ;;  %s392_s11 = int_to_ptr.vmem [resolvable:$true] %s391_s11 }
  0x5d   : > { %s1556_s14 = scalar_lea.vmem %s392_s11, 2048  ;;  %p1564_p11 = scmp.lt.s32.totalorder %s392_s11, %s392_s11 }
  0x5e   : > { %p1557_p1 = scmp.ne.s32.totalorder %s392_s11, %s1556_s14  ;;  %p1565_p3 = scmp.lt.s32.totalorder %s1556_s14, %s1556_s14 }
  0x60   : > { %p1559_p4 = pnand %p1557_p1, %p2326_p6  ;;  %p1566_p9 = por %p1565_p3, %p1564_p11 }
  0x61   : > { %1362 = dma.hbm_to_vmem [thread:$0]  (!%p1936_p10), %s2325_s5, 2048, %s376_s26, [#allocation9], %s2324_s28, %s2324_s28, %s2323_s22  }
  0x62   : > { %p1560_p8 = pneg %p1559_p4 }
  0x64   : > { %p1567_p5 = pnand %p1566_p9, %p1560_p8 }
  0x66   : > { %1570 = shalt.err (!%p1567_p5)
}
  0x67   : > { %1365 = dma.hbm_to_vmem [thread:$0]  (!%p1936_p10), %s2270_s7, 2048, %s392_s11, [#allocation12], %s2324_s28, %s2324_s28, %s2323_s22  }
  0x68   : > { %s419_s12 = scalar_lea.hbm %s2263_s0, %s1982_s8  ;;  %s412_s3 = scalar_lea.vmem [#allocation2], %s1979_s16 }
  0x69   : > { %s421_s30 = sshll.u32 %s412_s3, 4  ;;  %s2327_s14 = sand.u32 1, %s1771_s19   ;;  %s422_s30 = int_to_ptr.vmem [resolvable:$true] %s421_s30 }
  0x6a   : > { %s409_s13 = scalar_lea.sflag [#allocation3], %s2327_s14  ;;  %s1584_s1 = scalar_lea.vmem %s422_s30, 128 }
  0x6b   : > { %p1585_p7 = scmp.ne.s32.totalorder %s422_s30, %s1584_s1  ;;  %p2328_p12 = pneg %p1984_p0 }
  0x6c   : > { %s1799_s26 = smov [#allocation2]  }
  0x6d   : > { %p1587_p13 = pnand %p1585_p7, %p2328_p12  ;;  %s1589_s17 = sshll.u32 %s1799_s26, 4  ;;  %s1590_s17 = int_to_ptr.vmem [resolvable:$false] %s1589_s17 }
  0x6e   : > { %s1591_s5 = scalar_lea.vmem %s1590_s17, 256  ;;  %p1592_p10 = scmp.lt.s32.totalorder %s422_s30, %s1590_s17 }
  0x6f   : > { %p1588_p2 = pneg %p1587_p13  ;;  %p1593_p1 = scmp.lt.s32.totalorder %s1591_s5, %s1584_s1 }
  0x71   : > { %p1594_p6 = por %p1593_p1, %p1592_p10 }
  0x73   : > { %p1595_p4 = pnand %p1594_p6, %p1588_p2 }
  0x75   : > { %1598 = shalt.err (!%p1595_p4)
}
  0x76   : > { %1369 = dma.hbm_to_vmem [thread:$0]  (!%p1984_p0), %s419_s12, 128, %s422_s30, %s409_s13  }
  0x77   : > { %s459_s11 = scalar_lea.hbm %s2265_s2, %s1982_s8  ;;  %s452_s23 = scalar_lea.vmem [#allocation7], %s1979_s16 }
  0x78   : > { %s461_s6 = sshll.u32 %s452_s23, 4  ;;  %p2329_p11 = pmov %p2328_p12  ;;  %s462_s6 = int_to_ptr.vmem [resolvable:$true] %s461_s6 }
  0x79   : > { %s1612_s3 = scalar_lea.vmem %s462_s6, 128  ;;  %s1800_s1 = smov [#allocation7]  }
  0x7a   : > { %p1613_p8 = scmp.ne.s32.totalorder %s462_s6, %s1612_s3  ;;  %s1617_s5 = sshll.u32 %s1800_s1, 4  ;;  %s1618_s5 = int_to_ptr.vmem [resolvable:$false] %s1617_s5 }
  0x7b   : > { %s1619_s14 = scalar_lea.vmem %s1618_s5, 256  ;;  %p1620_p5 = scmp.lt.s32.totalorder %s462_s6, %s1618_s5 }
  0x7c   : > { %p1615_p3 = pnand %p1613_p8, %p2329_p11  ;;  %p1621_p7 = scmp.lt.s32.totalorder %s1619_s14, %s1612_s3 }
  0x7e   : > { %p1616_p9 = pneg %p1615_p3  ;;  %p1622_p12 = por %p1621_p7, %p1620_p5 }
  0x80   : > { %p1623_p13 = pnand %p1622_p12, %p1616_p9 }
  0x82   : > { %1626 = shalt.err (!%p1623_p13)
}
  0x83   : > { %1375 = dma.hbm_to_vmem [thread:$0]  (!%p1984_p0), %s459_s11, 128, %s462_s6, %s1997_s15  }
  0x84   : > { %p2330_p2 = scmp.ne.s32.totalorder %s2312_s29, 0 }
  0x85   : > { %s2055_s8 = sand.u32 (!%p2330_p2), 1, %s1767_s18   ;;  %p2331_p10 = scmp.ne.s32.totalorder (!%p2330_p2), %s2309_s27, 0 }
  0x86   : > { %470 = sbr.rel (%p2330_p2) target bundleno = 438 (0x1b6), region = 56  ;;  %s2058_s16 = sshll.u32 (!%p2330_p2), %s2055_s8, 3 }
  0x87   : > { %s473_s12 = scalar_lea.sflag (!%p2330_p2), [#allocation3], %s2055_s8  ;;  %s476_s30 = scalar_lea.vmem (!%p2330_p2), [#allocation2], %s2058_s16 }
  0x8b   : > { %1738 = dma.done.wait (%p2331_p10), %s473_s12, 128  }
  0x8c   : > { %1740 = vsyncadd (%p2331_p10), %s473_s12, 4294967168  ;;  %s481_s10 = sand.u32 1, %s1907_s25   ;;  %s485_s15 = scalar_lea.vmem [#allocation5], %s2058_s16 }
  0x8d   : > { %s482_s29 = scalar_lea.sflag [#allocation6], %s481_s10 }
  0x8e   : > { %1742 = dma.done.wait (%p2331_p10), %s482_s29, 256  }
  0x8f   : > { %1744 = vsyncadd (%p2331_p10), %s482_s29, 4294967040  ;;  %s494_s13 = scalar_lea.vmem [#allocation7], %s2058_s16  ;;  %p2332_p0 = scmp.eq.s32.totalorder %s1907_s25, 0 }
  0x91   : > { %1746 = dma.done.wait (%p2332_p0), [#allocation9], 4096   ;;  %p2333_p1 = pmov %p2332_p0 }
  0x92   : > { %p2334_p6 = pmov %p2332_p0 }
  0x93   : > { %1748 = vsyncadd (%p2333_p1), [#allocation9], 4294963200 }
  0x94   : > { %1750 = dma.done.wait (%p2334_p6), [#allocation12], 2048   ;;  %p2335_p4 = pmov %p2332_p0 }
  0x95   : > { %v1801_v0 = vmov 0.0   ;;  %vm1802_vm0 = vmmov 0   ;;  %v581_v1 = vld [vmem:[#allocation8 + $0x78] sm:$0xff]  ;;  %v580_v2 = vld [vmem:[#allocation8 + $0x70] sm:$0xff]  ;;  %v579_v5 = vld [vmem:[#allocation8 + $0x68] sm:$0xff]  ;;  %s1168_s27 = sshll.u32 %s1779_s21, 1 }
  0x96   : > { %1752 = vsyncadd (%p2335_p4), [#allocation12], 4294965248  ;;  %1227 = vmatprep.subr.mxu0 %v1801_v0  ;;  %1262 = vmatprep.subr.mxu1 %v1801_v0  ;;  %v675_v3 = vld [vmem:[#allocation10 + $0x78] sm:$0xff]  ;;  %v674_v4 = vld [vmem:[#allocation10 + $0x70] sm:$0xff]  ;;  %s876_s26 = sadd.s32 %s1775_s20, %s1168_s27  ;;  %s550_s11 = scalar_lea.vmem [#allocation13], %s2058_s16 }
  0x97   : > { %1259 = vmatprep.mubr.msk.f32.mxu0 %vm1802_vm0, %v1801_v0  ;;  %1294 = vmatprep.mubr.msk.f32.mxu1 %vm1802_vm0, %v1801_v0  ;;  %v673_v6 = vld [vmem:[#allocation10 + $0x68] sm:$0xff]  ;;  %v578_v7 = vld [vmem:[#allocation8 + $0x60] sm:$0xff]  ;;  %v577_v9 = vld [vmem:[#allocation8 + $0x58] sm:$0xff]  ;;  %s2148_s28 = sshll.u32 %s876_s26, 7  ;;  %s880_s23 = sshll.u32 %s550_s11, 4  ;;  %s2157_s23 = int_to_ptr.vmem [resolvable:$true] %s880_s23 }
  0x98   : > { %1228 = vmatpush3.msra.mxu0 %v581_v1  ;;  %1263 = vmatpush3.msra.mxu1 %v675_v3  ;;  %v672_v8 = vld [vmem:[#allocation10 + $0x60] sm:$0xff]  ;;  %v671_v10 = vld [vmem:[#allocation10 + $0x58] sm:$0xff]  ;;  %v576_v11 = vld [vmem:[#allocation8 + $0x50] sm:$0xff]  ;;  %s2336_s6 = sld [smem:[#allocation28_spill]]  ;;  %s1803_s27 = smov [#allocation13]  }
  0x99   : > { %1229 = vmatprep.subr.mxu0 %v1801_v0  ;;  %1264 = vmatprep.subr.mxu1 %v1801_v0  ;;  %v670_v12 = vld [vmem:[#allocation10 + $0x50] sm:$0xff]  ;;  %v575_v13 = vld [vmem:[#allocation8 + $0x48] sm:$0xff]  ;;  %v574_v15 = vld [vmem:[#allocation8 + $0x40] sm:$0xff]  ;;  %s2337_s5 = sld [smem:[#allocation35_spill]]  ;;  %s1631_s26 = sshll.u32 %s1803_s27, 4  ;;  %s1632_s26 = int_to_ptr.vmem [resolvable:$false] %s1631_s26 }
  0x9a   : > { %1230 = vmatpush3.msra.mxu0 %v580_v2  ;;  %1265 = vmatpush3.msra.mxu1 %v674_v4  ;;  %v669_v14 = vld [vmem:[#allocation10 + $0x48] sm:$0xff]  ;;  %v668_v16 = vld [vmem:[#allocation10 + $0x40] sm:$0xff]  ;;  %v573_v17 = vld [vmem:[#allocation8 + $0x38] sm:$0xff]  ;;  %s2338_s12 = sld [smem:[#allocation33_spill]]  ;;  %s1633_s17 = scalar_lea.vmem %s1632_s26, 256 }
  0x9b   : > { %1231 = vmatprep.subr.mxu0 %v1801_v0  ;;  %1266 = vmatprep.subr.mxu1 %v1801_v0  ;;  %v667_v18 = vld [vmem:[#allocation10 + $0x38] sm:$0xff]  ;;  %v572_v19 = vld [vmem:[#allocation8 + $0x30] sm:$0xff]  ;;  %v571_v21 = vld [vmem:[#allocation8 + $0x28] sm:$0xff]  ;;  %p1634_p5 = scmp.lt.s32.totalorder %s2157_s23, %s1632_s26 }
  0x9c   : > { %1232 = vmatpush3.msra.mxu0 %v579_v5  ;;  %1267 = vmatpush3.msra.mxu1 %v673_v6  ;;  %v666_v20 = vld [vmem:[#allocation10 + $0x30] sm:$0xff]  ;;  %v665_v22 = vld [vmem:[#allocation10 + $0x28] sm:$0xff]  ;;  %v570_v23 = vld [vmem:[#allocation8 + $0x20] sm:$0xff] }
  0x9d   : > { %1233 = vmatprep.subr.mxu0 %v1801_v0  ;;  %1268 = vmatprep.subr.mxu1 %v1801_v0  ;;  %v664_v24 = vld [vmem:[#allocation10 + $0x20] sm:$0xff]  ;;  %v569_v25 = vld [vmem:[#allocation8 + $0x18] sm:$0xff]  ;;  %v568_v27 = vld [vmem:[#allocation8 + $0x10] sm:$0xff] }
  0x9e   : > { %1234 = vmatpush3.msra.mxu0 %v578_v7  ;;  %1269 = vmatpush3.msra.mxu1 %v672_v8  ;;  %v663_v26 = vld [vmem:[#allocation10 + $0x18] sm:$0xff]  ;;  %v662_v28 = vld [vmem:[#allocation10 + $0x10] sm:$0xff]  ;;  %v567_v29 = vld [vmem:[#allocation8 + $0x8] sm:$0xff]  ;;  %p2339_p11 = scmp.ne.s32.totalorder %s2336_s6, 0 }
  0x9f   : > { %1235 = vmatprep.subr.mxu0 %v1801_v0  ;;  %1270 = vmatprep.subr.mxu1 %v1801_v0  ;;  %v661_v30 = vld [vmem:[#allocation10 + $0x8] sm:$0xff]  ;;  %v566_v31 = vld [vmem:[#allocation8] sm:$0xff]  ;;  %v565_v33 = vld [vmem:[%s476_s30] sm:$0xff]  ;;  %s2155_s14 = scalar_lea.hbm %s2337_s5, %s2148_s28  ;;  %s557_s30 = scalar_lea.vmem [#allocation14], %s2058_s16 }
  0xa0   : > { %1236 = vmatpush3.msra.mxu0 %v577_v9  ;;  %1271 = vmatpush3.msra.mxu1 %v671_v10  ;;  %v660_v32 = vld [vmem:[#allocation10] sm:$0xff]  ;;  %v771_v34 = vld [vmem:[#allocation11 + $0x78] sm:$0xff]  ;;  %v770_v36 = vld [vmem:[#allocation11 + $0x70] sm:$0xff]  ;;  %s2165_s29 = sshll.u32 %s557_s30, 4  ;;  %s896_s29 = int_to_ptr.vmem [resolvable:$true] %s2165_s29 }
  0xa1   : > { %1237 = vmatprep.subr.mxu0 %v1801_v0  ;;  %1272 = vmatprep.subr.mxu1 %v1801_v0  ;;  %v659_v35 = vld [vmem:[%s485_s15] sm:$0xff]  ;;  %v767_v39 = vld [vmem:[#allocation11 + $0x58] sm:$0xff]  ;;  %v766_v40 = vld [vmem:[#allocation11 + $0x50] sm:$0xff]  ;;  %s855_s15 = scalar_lea.sflag [#allocation4], %s2055_s8 }
  0xa2   : > { %1238 = vmatpush3.msra.mxu0 %v576_v11  ;;  %1273 = vmatpush3.msra.mxu1 %v670_v12  ;;  %v769_v37 = vld [vmem:[#allocation11 + $0x68] sm:$0xff]  ;;  %v768_v38 = vld [vmem:[#allocation11 + $0x60] sm:$0xff]  ;;  %v763_v43 = vld [vmem:[#allocation11 + $0x38] sm:$0xff] }
  0xa3   : > { %1239 = vmatprep.subr.mxu0 %v1801_v0  ;;  %1274 = vmatprep.subr.mxu1 %v1801_v0  ;;  %v765_v41 = vld [vmem:[#allocation11 + $0x48] sm:$0xff]  ;;  %v764_v42 = vld [vmem:[#allocation11 + $0x40] sm:$0xff]  ;;  %v762_v44 = vld [vmem:[#allocation11 + $0x30] sm:$0xff] }
  0xa4   : > { %1240 = vmatpush3.msra.mxu0 %v575_v13  ;;  %1275 = vmatpush3.msra.mxu1 %v669_v14  ;;  %v761_v45 = vld [vmem:[#allocation11 + $0x28] sm:$0xff]  ;;  %v760_v46 = vld [vmem:[#allocation11 + $0x20] sm:$0xff]  ;;  %v759_v47 = vld [vmem:[#allocation11 + $0x18] sm:$0xff] }
  0xa5   : > { %1241 = vmatprep.subr.mxu0 %v1801_v0  ;;  %1276 = vmatprep.subr.mxu1 %v1801_v0  ;;  %v758_v48 = vld [vmem:[#allocation11 + $0x10] sm:$0xff]  ;;  %v757_v49 = vld [vmem:[#allocation11 + $0x8] sm:$0xff]  ;;  %v756_v50 = vld [vmem:[#allocation11] sm:$0xff] }
  0xa6   : > { %1242 = vmatpush3.msra.mxu0 %v574_v15  ;;  %1277 = vmatpush3.msra.mxu1 %v668_v16  ;;  %v755_v51 = vld [vmem:[%s494_s13] sm:$0xff]  ;;  %s1627_s13 = scalar_lea.vmem %s2157_s23, 128 }
  0xa7   : > { %1243 = vmatprep.subr.mxu0 %v1801_v0  ;;  %1278 = vmatprep.subr.mxu1 %v1801_v0  ;;  %v1162_v52 = vld [vmem:[%s2267_s4] ss:$0 sm:$0xff]  ;;  %p1628_p8 = scmp.ne.s32.totalorder %s2157_s23, %s1627_s13  ;;  %p1635_p7 = scmp.lt.s32.totalorder %s1633_s17, %s1627_s13 }
  0xa8   : > { %1244 = vmatpush3.msra.mxu0 %v573_v17  ;;  %1279 = vmatpush3.msra.mxu1 %v667_v18  ;;  %v1163_v57 = vld [vmem:[%s2338_s12] ss:$0 sm:$0xff] }
  0xa9   : > { %1245 = vmatprep.subr.mxu0 %v1801_v0  ;;  %1280 = vmatprep.subr.mxu1 %v1801_v0  ;;  %p1629_p3 = pnand %p1628_p8, %p2339_p11  ;;  %p1636_p12 = por %p1635_p7, %p1634_p5 }
  0xaa   : > { %1246 = vmatpush3.msra.mxu0 %v572_v19  ;;  %1281 = vmatpush3.msra.mxu1 %v666_v20 }
  0xab   : > { %1247 = vmatprep.subr.mxu0 %v1801_v0  ;;  %1282 = vmatprep.subr.mxu1 %v1801_v0  ;;  %p1630_p9 = pneg %p1629_p3 }
  0xac   : > { %1248 = vmatpush3.msra.mxu0 %v571_v21  ;;  %1283 = vmatpush3.msra.mxu1 %v665_v22 }
  0xad   : > { %1249 = vmatprep.subr.mxu0 %v1801_v0  ;;  %1284 = vmatprep.subr.mxu1 %v1801_v0  ;;  %p1637_p13 = pnand %p1636_p12, %p1630_p9 }
  0xae   : > { %1250 = vmatpush3.msra.mxu0 %v570_v23  ;;  %1285 = vmatpush3.msra.mxu1 %v664_v24 }
  0xaf   : > { %1251 = vmatprep.subr.mxu0 %v1801_v0  ;;  %1286 = vmatprep.subr.mxu1 %v1801_v0 }
  0xb0   : > { %1252 = vmatpush3.msra.mxu0 %v569_v25  ;;  %1287 = vmatpush3.msra.mxu1 %v663_v26 }
  0xb1   : > { %1253 = vmatprep.subr.mxu0 %v1801_v0  ;;  %1288 = vmatprep.subr.mxu1 %v1801_v0 }
  0xb2   : > { %1254 = vmatpush3.msra.mxu0 %v568_v27  ;;  %1289 = vmatpush3.msra.mxu1 %v662_v28 }
  0xb3   : > { %1255 = vmatprep.subr.mxu0 %v1801_v0  ;;  %1290 = vmatprep.subr.mxu1 %v1801_v0 }
  0xb4   : > { %1256 = vmatpush3.msra.mxu0 %v567_v29  ;;  %1291 = vmatpush3.msra.mxu1 %v661_v30 }
  0xb5   : > { %1257 = vmatprep.subr.mxu0 %v1801_v0  ;;  %1292 = vmatprep.subr.mxu1 %v1801_v0 }
  0xb6   : > { %1258 = vmatpush3.msra.mxu0 %v566_v31  ;;  %1293 = vmatpush3.msra.mxu1 %v660_v32 }
  0xb7   : > { %1260 = vmatmul.mubr.f32.vlgmr.msra.gmra.mxu0 %v565_v33  ;;  %1297 = vmatprep.subr.mxu0 %v1801_v0 }
  0xb8   : > { %1298 = vmatpush3.msra.mxu0 %v771_v34  ;;  %1295 = vmatmul.mubr.f32.vlgmr.msra.gmra.mxu1 %v659_v35 }
  0xb9   : > { %1299 = vmatprep.subr.mxu0 %v1801_v0  ;;  %1329 = vmatprep.mubr.msk.f32.mxu0 %vm1802_vm0, %v1801_v0 }
  0xba   : > { %1300 = vmatpush3.msra.mxu0 %v770_v36 }
  0xbb   : > { %1301 = vmatprep.subr.mxu0 %v1801_v0 }
  0xbc   : > { %1302 = vmatpush3.msra.mxu0 %v769_v37 }
  0xbd   : > { %1303 = vmatprep.subr.mxu0 %v1801_v0 }
  0xbe   : > { %1304 = vmatpush3.msra.mxu0 %v768_v38 }
  0xbf   : > { %1305 = vmatprep.subr.mxu0 %v1801_v0 }
  0xc0   : > { %1306 = vmatpush3.msra.mxu0 %v767_v39 }
  0xc1   : > { %1307 = vmatprep.subr.mxu0 %v1801_v0 }
  0xc2   : > { %1308 = vmatpush3.msra.mxu0 %v766_v40 }
  0xc3   : > { %1309 = vmatprep.subr.mxu0 %v1801_v0 }
  0xc4   : > { %1310 = vmatpush3.msra.mxu0 %v765_v41 }
  0xc5   : > { %1311 = vmatprep.subr.mxu0 %v1801_v0 }
  0xc6   : > { %1312 = vmatpush3.msra.mxu0 %v764_v42 }
  0xc7   : > { %1313 = vmatprep.subr.mxu0 %v1801_v0 }
  0xc8   : > { %1314 = vmatpush3.msra.mxu0 %v763_v43 }
  0xc9   : > { %1315 = vmatprep.subr.mxu0 %v1801_v0 }
  0xca   : > { %1316 = vmatpush3.msra.mxu0 %v762_v44 }
  0xcb   : > { %1317 = vmatprep.subr.mxu0 %v1801_v0 }
  0xcc   : > { %1318 = vmatpush3.msra.mxu0 %v761_v45 }
  0xcd   : > { %1319 = vmatprep.subr.mxu0 %v1801_v0 }
  0xce   : > { %1320 = vmatpush3.msra.mxu0 %v760_v46 }
  0xcf   : > { %1321 = vmatprep.subr.mxu0 %v1801_v0 }
  0xd0   : > { %1322 = vmatpush3.msra.mxu0 %v759_v47 }
  0xd1   : > { %1323 = vmatprep.subr.mxu0 %v1801_v0 }
  0xd2   : > { %1324 = vmatpush3.msra.mxu0 %v758_v48 }
  0xd3   : > { %1325 = vmatprep.subr.mxu0 %v1801_v0 }
  0xd4   : > { %1326 = vmatpush3.msra.mxu0 %v757_v49 }
  0xd5   : > { %1327 = vmatprep.subr.mxu0 %v1801_v0 }
  0xd6   : > { %1328 = vmatpush3.msra.mxu0 %v756_v50 }
  0xd7   : > { %1330 = vmatmul.mubr.f32.vlgmr.msra.gmra.mxu0 %v755_v51 }
 0x177   : > { %v655_v53 = vpop.f32.mrf.mxu0 }
 0x178   : > { %v656_v54 = vadd.f32 %v1162_v52, %v655_v53  ;;  %v742_v55 = vpop.f32.mrf.mxu1 }
 0x179   : > { %v1261_v56 = vpop.f32.mrf.mxu0 }
 0x17a   : > { %851 = vst [vmem:[%s550_s11] sm:$0xff] %v656_v54  ;;  %v746_v58 = vadd.f32 %v742_v55, %v656_v54  ;;  %v1296_v59 = vpop.f32.mrf.mxu1 }
 0x17b   : > { %1640 = shalt.err (!%p1637_p13)
}
 0x17c   : > { %s1641_s22 = scalar_lea.hbm %s2155_s14, 128  ;;  %s1645_s3 = scalar_lea.hbm %s2337_s5, 512 }
 0x17d   : > { %p1642_p2 = scmp.ne.s32.totalorder %s2155_s14, %s1641_s22  ;;  %p1646_p1 = scmp.lt.s32.totalorder %s2155_s14, %s2337_s5 }
 0x17e   : > { %p1647_p6 = scmp.lt.s32.totalorder %s1645_s3, %s1641_s22 }
 0x17f   : > { %p1643_p10 = pnand %p1642_p2, %p2339_p11 }
 0x180   : > { %p1648_p4 = por %p1647_p6, %p1646_p1 }
 0x181   : > { %p1644_p0 = pneg %p1643_p10 }
 0x183   : > { %p1649_p8 = pnand %p1648_p4, %p1644_p0 }
 0x185   : > { %1652 = shalt.err (!%p1649_p8)
}
 0x186   : > { %1350 = dma.vmem_to_hbm [thread:$0]  (%p2339_p11), %s2157_s23, 128, %s2155_s14, %s855_s15   ;;  %v754_v60 = vadd.f32 %v1163_v57, %v746_v58 }
 0x187   : > { %s2340_s13 = sld [smem:[#allocation36_spill]]  ;;  %s2197_s26 = scalar_lea.sflag [#allocation15], %s481_s10 }
 0x188   : > { %852 = vst [vmem:[%s557_s30] sm:$0xff] %v754_v60  ;;  %s1653_s17 = scalar_lea.vmem %s896_s29, 128  ;;  %s1804_s22 = smov [#allocation14]  }
 0x189   : > { %p1654_p3 = scmp.ne.s32.totalorder %s896_s29, %s1653_s17  ;;  %s1657_s8 = sshll.u32 %s1804_s22, 4  ;;  %s1658_s8 = int_to_ptr.vmem [resolvable:$false] %s1657_s8 }
 0x18a   : > { %s1659_s23 = scalar_lea.vmem %s1658_s8, 256  ;;  %p1660_p7 = scmp.lt.s32.totalorder %s896_s29, %s1658_s8 }
 0x18b   : > { %p1655_p9 = pnand %p1654_p3, %p2339_p11  ;;  %p1661_p12 = scmp.lt.s32.totalorder %s1659_s23, %s1653_s17 }
 0x18d   : > { %s893_s27 = scalar_lea.hbm %s2340_s13, %s2148_s28  ;;  %p1656_p5 = pneg %p1655_p9 }
 0x18e   : > { %p1662_p13 = por %p1661_p12, %p1660_p7 }
 0x190   : > { %p1663_p2 = pnand %p1662_p13, %p1656_p5 }
 0x192   : > { %1666 = shalt.err (!%p1663_p2)
}
 0x193   : > { %s1667_s14 = scalar_lea.hbm %s893_s27, 128  ;;  %s1671_s30 = scalar_lea.hbm %s2340_s13, 512 }
 0x194   : > { %p1668_p10 = scmp.ne.s32.totalorder %s893_s27, %s1667_s14  ;;  %p1672_p6 = scmp.lt.s32.totalorder %s893_s27, %s2340_s13 }
 0x195   : > { %p1673_p4 = scmp.lt.s32.totalorder %s1671_s30, %s1667_s14 }
 0x196   : > { %p1669_p0 = pnand %p1668_p10, %p2339_p11 }
 0x197   : > { %p1674_p8 = por %p1673_p4, %p1672_p6 }
 0x198   : > { %p1670_p1 = pneg %p1669_p0 }
 0x19a   : > { %p1675_p3 = pnand %p1674_p8, %p1670_p1 }
 0x19c   : > { %1678 = shalt.err (!%p1675_p3)
}
 0x19d   : > { %1351 = dma.vmem_to_hbm [thread:$0]  (%p2339_p11), %s896_s29, 128, %s893_s27, %s2197_s26   ;;  %v838_v61 = vpop.f32.mrf.mxu0 }
 0x19e   : > { %s2341_s20 = sld [smem:[#allocation34_spill]]  ;;  %s564_s21 = scalar_lea.vmem [#allocation16], %s2058_s16  ;;  %v842_v63 = vadd.f32 %v838_v61, %v754_v60 }
 0x19f   : > { %s910_s12 = sshll.u32 %s564_s21, 4  ;;  %v1331_v0 = vpop.f32.mrf.mxu0  ;;  %s2342_s8 = sld [smem:[#allocation37_spill]]  ;;  %s911_s12 = int_to_ptr.vmem [resolvable:$true] %s910_s12 }
 0x1a0   : > { %s1679_s14 = scalar_lea.vmem %s911_s12, 128  ;;  %s1805_s29 = smov [#allocation16]  }
 0x1a1   : > { %p1680_p9 = scmp.ne.s32.totalorder %s911_s12, %s1679_s14  ;;  %s1683_s27 = sshll.u32 %s1805_s29, 4  ;;  %s1684_s27 = int_to_ptr.vmem [resolvable:$false] %s1683_s27 }
 0x1a2   : > { %s1685_s25 = scalar_lea.vmem %s1684_s27, 256  ;;  %p1686_p12 = scmp.lt.s32.totalorder %s911_s12, %s1684_s27 }
 0x1a3   : > { %p1681_p5 = pnand %p1680_p9, %p2339_p11  ;;  %p1687_p13 = scmp.lt.s32.totalorder %s1685_s25, %s1679_s14 }
 0x1a4   : > { %v1164_v62 = vld [vmem:[%s2341_s20] ss:$0 sm:$0xff] }
 0x1a5   : > { %v850_v1 = vadd.f32 %v1164_v62, %v842_v63  ;;  %s908_s23 = scalar_lea.hbm %s2342_s8, %s2148_s28  ;;  %p1682_p7 = pneg %p1681_p5 }
 0x1a6   : > { %p1688_p2 = por %p1687_p13, %p1686_p12 }
 0x1a7   : > { %853 = vst [vmem:[%s564_s21] sm:$0xff] %v850_v1 }
 0x1a8   : > { %p1689_p10 = pnand %p1688_p2, %p1682_p7 }
 0x1aa   : > { %1692 = shalt.err (!%p1689_p10)
}
 0x1ab   : > { %s1693_s16 = scalar_lea.hbm %s908_s23, 128  ;;  %s1697_s30 = scalar_lea.hbm %s2342_s8, 512 }
 0x1ac   : > { %p1694_p0 = scmp.ne.s32.totalorder %s908_s23, %s1693_s16  ;;  %p1698_p4 = scmp.lt.s32.totalorder %s908_s23, %s2342_s8 }
 0x1ad   : > { %p1699_p8 = scmp.lt.s32.totalorder %s1697_s30, %s1693_s16 }
 0x1ae   : > { %p1695_p1 = pnand %p1694_p0, %p2339_p11 }
 0x1af   : > { %p1700_p3 = por %p1699_p8, %p1698_p4 }
 0x1b0   : > { %p1696_p6 = pneg %p1695_p1 }
 0x1b2   : > { %p1701_p9 = pnand %p1700_p3, %p1696_p6 }
 0x1b4   : > { %1704 = shalt.err (!%p1701_p9)
}
 0x1b5   : > { %1352 = dma.vmem_to_hbm [thread:$0]  (%p2339_p11), %s911_s12, 128, %s908_s23, %s2197_s26  }
 0x1b6 PF: > { %s2343_s3 = sld [smem:[#allocation23_spill]]  ;;  %p1393_p5 = scmp.ge.s32.totalorder %s1791_s24, 2 }
 0x1b7   : > { %s2344_s1 = sld [smem:[#allocation26_spill]] }
 0x1bc   : > { %s922_s20 = sand.u32 1, %s2343_s3  }
 0x1bd   : > { %p2345_p7 = scmp.ne.s32.totalorder %s2344_s1, 0  ;;  %s923_s21 = scalar_lea.sflag [#allocation4], %s922_s20 }
 0x1bf   : > { %p1377_p12 = pnand %p1393_p5, %p2345_p7 }
 0x1c1   : > { %p1378_p13 = pneg %p1377_p12 }
 0x1c3   : > { %1754 = dma.done.wait (%p1378_p13), %s923_s21, 128  }
 0x1c4   : > { %1756 = vsyncadd (%p1378_p13), %s923_s21, 4294967168  ;;  %s2346_s17 = sadd.s32 4294967294, %s1791_s24  }
 0x1c5   : > { %s931_s22 = sand.u32 1, %s2346_s17  }
 0x1c6   : > { %s932_s14 = scalar_lea.sflag [#allocation15], %s931_s22 }
 0x1c7   : > { %1758 = dma.done.wait (%p1378_p13), %s932_s14, 256  }
 0x1c8   : > { %1760 = vsyncadd (%p1378_p13), %s932_s14, 4294967040  ;;  %s36_s24 = sadd.s32 1, %s1791_s24   ;;  %s2347_s20 = sld [smem:[#allocation24_spill]] }
 0x1c9   : > { %p33_p11 = scmp.ge.s32.totalorder %s36_s24, 6   ;;  %s2348_s21 = sld [smem:[#allocation25_spill]] }
 0x1ca   : > { %s2349_s22 = sld [smem:[#allocation27_spill]]  ;;  %s2351_s17 = smov %s1767_s18 }
 0x1cb   : > { %s2350_s23 = sld [smem:[#allocation29_spill]]  ;;  %s2352_s18 = smov %s1771_s19 }
 0x1cc   : > { %s2353_s19 = smov %s1990_s9  ;;  %35 = sbr.rel (!%p33_p11) target bundleno = 22 (0x16), region = 169 }
 0x1d1   :  { %946 = vsyncpa [#allocation3], 1 }
 0x1d2   :  { %948 = vsyncpa [#allocation3 + $0x1], 1 }
 0x1d3   :  { %949 = vsyncpa [#allocation6], 1 }
 0x1d4   :  { %951 = vsyncpa [#allocation6 + $0x1], 1 }
 0x1d5   :  { %952 = vsyncpa [#allocation9], 1 }
 0x1d6   :  { %953 = vsyncpa [#allocation12], 1 }
 0x1d7   :  { %954 = vsyncpa [#allocation4], 1 }
 0x1d8   :  { %956 = vsyncpa [#allocation4 + $0x1], 1 }
 0x1d9   :  { %957 = vsyncpa [#allocation15], 1 }
 0x1da   :  { %959 = vsyncpa [#allocation15 + $0x1], 1 }

</bundles_post_ra>
